<compile_context>
chip_gen: v7x
topology: tpu7x:2x2x1
jax: 0.10.0
libtpu: 0.0.40
codegen_flags: <defaults>
</compile_context>

<pallas_src>
import jax
import jax.numpy as jnp
from jax.experimental import pallas as pl
from jax.experimental.pallas import tpu as pltpu


def gnn_layer_kernel(L_ref, sl_ref, f_ref, w1t_ref, w2t_ref, bias_ref, o_ref):
    L = L_ref[0]          # (N, N)
    S = sl_ref[0]         # (N, N)   selfLoop (general matrix)
    f = f_ref[0]          # (N, Fin)

    # Adjacency matmuls (MXU).  Lf is reused by both branches.
    Lf = jnp.dot(L, f, preferred_element_type=jnp.float32)          # L @ f
    sLf = jnp.dot(S, f, preferred_element_type=jnp.float32)         # selfLoop @ f
    L1f = Lf + sLf                                                   # (L + selfLoop) @ f
    inter_feats = Lf * f                                             # elementwise (VPU)
    Li = jnp.dot(L, inter_feats, preferred_element_type=jnp.float32)  # L @ inter_feats

    # Fused projection: L1f @ W1^T + Li @ W2^T + (b1 + b2), lane-dense output.
    out = (jnp.dot(L1f, w1t_ref[...], preferred_element_type=jnp.float32)
           + jnp.dot(Li, w2t_ref[...], preferred_element_type=jnp.float32)
           + bias_ref[...])
    o_ref[0] = out.astype(o_ref.dtype)


def gnn_layer_batched(L, selfLoop, features, W1, b1, W2, b2):
    """Batched GNNLayer forward. W1, W2 in PyTorch Linear layout (out, in)."""
    B, N, _ = L.shape
    Fin = features.shape[-1]
    Fout = W1.shape[0]
    Fout_pad = max(128, ((Fout + 127) // 128) * 128)   # lane-dense output width

    pad = Fout_pad - Fout
    W1T = jnp.pad(W1.T.astype(jnp.float32), ((0, 0), (0, pad)))      # (Fin, Fout_pad)
    W2T = jnp.pad(W2.T.astype(jnp.float32), ((0, 0), (0, pad)))      # (Fin, Fout_pad)
    bias = jnp.pad((b1 + b2).astype(jnp.float32).reshape(1, Fout),
                   ((0, 0), (0, pad)))                               # (1, Fout_pad)

    out_pad = pl.pallas_call(
        gnn_layer_kernel,
        out_shape=jax.ShapeDtypeStruct((B, N, Fout_pad), jnp.float32),
        grid=(B,),
        in_specs=[
            pl.BlockSpec((1, N, N), lambda b: (b, 0, 0)),        # L
            pl.BlockSpec((1, N, N), lambda b: (b, 0, 0)),        # selfLoop
            pl.BlockSpec((1, N, Fin), lambda b: (b, 0, 0)),      # features
            pl.BlockSpec((Fin, Fout_pad), lambda b: (0, 0)),     # W1^T (resident)
            pl.BlockSpec((Fin, Fout_pad), lambda b: (0, 0)),     # W2^T (resident)
            pl.BlockSpec((1, Fout_pad), lambda b: (0, 0)),       # b1 + b2
        ],
        out_specs=pl.BlockSpec((1, N, Fout_pad), lambda b: (b, 0, 0)),
        compiler_params=pltpu.CompilerParams(
            dimension_semantics=("parallel",)),
    )(L, selfLoop, features, W1T, W2T, bias)

    return out_pad[..., :Fout]


def gnn_layer(L, selfLoop, features, W1, b1, W2, b2):
    """Single-graph wrapper matching the PyTorch module signature."""
    out = gnn_layer_batched(L[None], selfLoop[None], features[None],
                            W1, b1, W2, b2)
    return out[0]


if __name__ == "__main__":
    key = jax.random.PRNGKey(0)
    B, N, in_feats, out_feats = 2, 16, 32, 32

    k_L, k_sl, k_f, k_w1, k_b1, k_w2, k_b2 = jax.random.split(key, 7)

    # Batched dense adjacency matrices; selfLoop = identity plus a small
    # perturbation to exercise the fully general (non-diagonal) path.
    L = jax.random.uniform(k_L, (B, N, N), dtype=jnp.float32)
    selfLoop = (jnp.broadcast_to(jnp.eye(N, dtype=jnp.float32), (B, N, N))
                + 0.01 * jax.random.uniform(k_sl, (B, N, N), dtype=jnp.float32))
    features = jax.random.normal(k_f, (B, N, in_feats), dtype=jnp.float32)

    # Deterministic Linear parameters (PyTorch layout: (out_feats, in_feats)).
    bound = 1.0 / (in_feats ** 0.5)
    W1 = jax.random.uniform(k_w1, (out_feats, in_feats), jnp.float32, -bound, bound)
    b1 = jax.random.uniform(k_b1, (out_feats,), jnp.float32, -bound, bound)
    W2 = jax.random.uniform(k_w2, (out_feats, in_feats), jnp.float32, -bound, bound)
    b2 = jax.random.uniform(k_b2, (out_feats,), jnp.float32, -bound, bound)

    out = gnn_layer_batched(L, selfLoop, features, W1, b1, W2, b2)
    out = jax.block_until_ready(out)

    # Pure-JAX reference of the original (unfused) math.
    L1 = L + selfLoop
    inter_feats = jnp.einsum("bij,bjf->bif", L, features) * features
    ref = (jnp.einsum("bij,bjf->bif", L1, features) @ W1.T + b1
           + jnp.einsum("bij,bjf->bif", L, inter_feats) @ W2.T + b2)
    assert out.shape == (B, N, out_feats)
    assert jnp.allclose(out, ref, atol=1e-4, rtol=1e-4), "mismatch vs reference"

    # Single-graph wrapper check.
    out1 = jax.block_until_ready(
        gnn_layer(L[0], selfLoop[0], features[0], W1, b1, W2, b2))
    assert jnp.allclose(out1, ref[0], atol=1e-4, rtol=1e-4), "single-graph mismatch"

    print("KERNEL_OK")
</pallas_src>

<mosaic_0001>
module attributes {stable_mosaic.version = 11 : i64} {
  func.func @gnn_layer_kernel(%arg0: i32, %arg1: memref<1x16x16xf32, #tpu.memory_space<vmem>>, %arg2: memref<1x16x16xf32, #tpu.memory_space<vmem>>, %arg3: memref<1x16x32xf32, #tpu.memory_space<vmem>>, %arg4: memref<32x128xf32, #tpu.memory_space<vmem>>, %arg5: memref<32x128xf32, #tpu.memory_space<vmem>>, %arg6: memref<1x128xf32, #tpu.memory_space<vmem>>, %arg7: memref<1x16x128xf32, #tpu.memory_space<vmem>>) attributes {dimension_semantics = [#tpu.dimension_semantics<parallel>], iteration_bounds = array<i64: 2>, scalar_prefetch = 0 : i64, scratch_operands = 0 : i64, tpu.core_type = #tpu.core_type<tc>, window_params = [{transform_indices = @transform_0, window_bounds = array<i64: 1, 16, 16>}, {transform_indices = @transform_1, window_bounds = array<i64: 1, 16, 16>}, {transform_indices = @transform_2, window_bounds = array<i64: 1, 16, 32>}, {pipeline_mode = #tpu.pipeline_mode<synchronous>, transform_indices = @transform_3, window_bounds = array<i64: 32, 128>}, {pipeline_mode = #tpu.pipeline_mode<synchronous>, transform_indices = @transform_4, window_bounds = array<i64: 32, 128>}, {pipeline_mode = #tpu.pipeline_mode<synchronous>, transform_indices = @transform_5, window_bounds = array<i64: 1, 128>}, {transform_indices = @transform_6, window_bounds = array<i64: 1, 16, 128>}]} {
    %c0 = arith.constant 0 : index
    %c0_0 = arith.constant 0 : index
    %c0_1 = arith.constant 0 : index
    %0 = vector.load %arg1[%c0, %c0_0, %c0_1] : memref<1x16x16xf32, #tpu.memory_space<vmem>>, vector<1x16x16xf32>
    %1 = vector.shape_cast %0 : vector<1x16x16xf32> to vector<16x16xf32>
    %c0_2 = arith.constant 0 : index
    %c0_3 = arith.constant 0 : index
    %c0_4 = arith.constant 0 : index
    %2 = vector.load %arg2[%c0_2, %c0_3, %c0_4] : memref<1x16x16xf32, #tpu.memory_space<vmem>>, vector<1x16x16xf32>
    %3 = vector.shape_cast %2 : vector<1x16x16xf32> to vector<16x16xf32>
    %c0_5 = arith.constant 0 : index
    %c0_6 = arith.constant 0 : index
    %c0_7 = arith.constant 0 : index
    %4 = vector.load %arg3[%c0_5, %c0_6, %c0_7] : memref<1x16x32xf32, #tpu.memory_space<vmem>>, vector<1x16x32xf32>
    %5 = vector.shape_cast %4 : vector<1x16x32xf32> to vector<16x32xf32>
    %cst = arith.constant dense<0.000000e+00> : vector<16x32xf32>
    %6 = tpu.matmul %1, %5, %cst {dimension_numbers = #tpu.dot_dimension_numbers<[1], [0], [0], [1], [0, 0, 1, 1], [], []>} : vector<16x16xf32>, vector<16x32xf32>, vector<16x32xf32> -> vector<16x32xf32>
    %cst_8 = arith.constant dense<0.000000e+00> : vector<16x32xf32>
    %7 = tpu.matmul %3, %5, %cst_8 {dimension_numbers = #tpu.dot_dimension_numbers<[1], [0], [0], [1], [0, 0, 1, 1], [], []>} : vector<16x16xf32>, vector<16x32xf32>, vector<16x32xf32> -> vector<16x32xf32>
    %8 = arith.addf %6, %7 : vector<16x32xf32>
    %9 = arith.mulf %6, %5 : vector<16x32xf32>
    %cst_9 = arith.constant dense<0.000000e+00> : vector<16x32xf32>
    %10 = tpu.matmul %1, %9, %cst_9 {dimension_numbers = #tpu.dot_dimension_numbers<[1], [0], [0], [1], [0, 0, 1, 1], [], []>} : vector<16x16xf32>, vector<16x32xf32>, vector<16x32xf32> -> vector<16x32xf32>
    %c0_10 = arith.constant 0 : index
    %c0_11 = arith.constant 0 : index
    %11 = vector.load %arg4[%c0_10, %c0_11] : memref<32x128xf32, #tpu.memory_space<vmem>>, vector<32x128xf32>
    %cst_12 = arith.constant dense<0.000000e+00> : vector<16x128xf32>
    %12 = tpu.matmul %8, %11, %cst_12 {dimension_numbers = #tpu.dot_dimension_numbers<[1], [0], [0], [1], [0, 0, 1, 1], [], []>} : vector<16x32xf32>, vector<32x128xf32>, vector<16x128xf32> -> vector<16x128xf32>
    %c0_13 = arith.constant 0 : index
    %c0_14 = arith.constant 0 : index
    %13 = vector.load %arg5[%c0_13, %c0_14] : memref<32x128xf32, #tpu.memory_space<vmem>>, vector<32x128xf32>
    %cst_15 = arith.constant dense<0.000000e+00> : vector<16x128xf32>
    %14 = tpu.matmul %10, %13, %cst_15 {dimension_numbers = #tpu.dot_dimension_numbers<[1], [0], [0], [1], [0, 0, 1, 1], [], []>} : vector<16x32xf32>, vector<32x128xf32>, vector<16x128xf32> -> vector<16x128xf32>
    %15 = arith.addf %12, %14 : vector<16x128xf32>
    %c0_16 = arith.constant 0 : index
    %c0_17 = arith.constant 0 : index
    %16 = vector.load %arg6[%c0_16, %c0_17] : memref<1x128xf32, #tpu.memory_space<vmem>>, vector<1x128xf32>
    %17 = vector.broadcast %16 : vector<1x128xf32> to vector<16x128xf32>
    %18 = arith.addf %15, %17 : vector<16x128xf32>
    %c0_18 = arith.constant 0 : index
    %c0_19 = arith.constant 0 : index
    %c0_20 = arith.constant 0 : index
    %19 = vector.load %arg7[%c0_18, %c0_19, %c0_20] : memref<1x16x128xf32, #tpu.memory_space<vmem>>, vector<1x16x128xf32>
    %20 = vector.shape_cast %19 : vector<1x16x128xf32> to vector<16x128xf32>
    %21 = vector.shape_cast %18 : vector<16x128xf32> to vector<1x16x128xf32>
    tpu.vector_store %arg7[%c0_18, %c0_19, %c0_20], %21 {strides = array<i32>} : memref<1x16x128xf32, #tpu.memory_space<vmem>>, vector<1x16x128xf32>,
    return
  }
  func.func @transform_0(%arg0: i32) -> (i32, i32, i32) {
    %c0_i32 = arith.constant 0 : i32
    %c0_i32_0 = arith.constant 0 : i32
    %c0_i32_1 = arith.constant 0 : i32
    return %arg0, %c0_i32, %c0_i32_0 : i32, i32, i32
  }
  func.func @transform_1(%arg0: i32) -> (i32, i32, i32) {
    %c0_i32 = arith.constant 0 : i32
    %c0_i32_0 = arith.constant 0 : i32
    %c0_i32_1 = arith.constant 0 : i32
    return %arg0, %c0_i32, %c0_i32_0 : i32, i32, i32
  }
  func.func @transform_2(%arg0: i32) -> (i32, i32, i32) {
    %c0_i32 = arith.constant 0 : i32
    %c0_i32_0 = arith.constant 0 : i32
    %c0_i32_1 = arith.constant 0 : i32
    return %arg0, %c0_i32, %c0_i32_0 : i32, i32, i32
  }
  func.func @transform_3(%arg0: i32) -> (i32, i32) {
    %c0_i32 = arith.constant 0 : i32
    %c0_i32_0 = arith.constant 0 : i32
    %c0_i32_1 = arith.constant 0 : i32
    return %c0_i32, %c0_i32_0 : i32, i32
  }
  func.func @transform_4(%arg0: i32) -> (i32, i32) {
    %c0_i32 = arith.constant 0 : i32
    %c0_i32_0 = arith.constant 0 : i32
    %c0_i32_1 = arith.constant 0 : i32
    return %c0_i32, %c0_i32_0 : i32, i32
  }
  func.func @transform_5(%arg0: i32) -> (i32, i32) {
    %c0_i32 = arith.constant 0 : i32
    %c0_i32_0 = arith.constant 0 : i32
    %c0_i32_1 = arith.constant 0 : i32
    return %c0_i32, %c0_i32_0 : i32, i32
  }
  func.func @transform_6(%arg0: i32) -> (i32, i32, i32) {
    %c0_i32 = arith.constant 0 : i32
    %c0_i32_0 = arith.constant 0 : i32
    %c0_i32_1 = arith.constant 0 : i32
    return %arg0, %c0_i32, %c0_i32_0 : i32, i32, i32
  }
}

</mosaic_0001>

<bundles_post_ra>
// kernel: tpu_custom_call.1
= control target key start
LH: loop header
LB: loop body
LE: loop exit
PB: predicated region body
PF: predicated region fallthrough
CT: control target
= control target key end

     0   :  { %s1779_s0 = inlined_call_operand.hbm [shape: f32[2,16,16], index: 0, kind: input, shape index: {}]   ;;  %s1780_s1 = inlined_call_operand.hbm [shape: f32[2,16,16], index: 1, kind: input, shape index: {}]   ;;  %s1781_s2 = inlined_call_operand.hbm [shape: f32[2,16,32], index: 2, kind: input, shape index: {}]   ;;  %s1782_s3 = inlined_call_operand.hbm [shape: f32[32,128], index: 3, kind: input, shape index: {}]   ;;  %s1783_s4 = inlined_call_operand.hbm [shape: f32[32,128], index: 4, kind: input, shape index: {}]   ;;  %s1784_s5 = inlined_call_operand.vmem [shape: f32[1,128], index: 5, kind: input, shape index: {}]   ;;  %s1785_s6 = inlined_call_operand.hbm [shape: f32[2,16,128], index: 6, kind: output, shape index: {}]  }
   0x1   :  { %1806 = sst [smem:[#allocation20_spill]] %s1780_s1 }
   0x2   :  { %1807 = sst [smem:[#allocation21_spill]] %s1782_s3 }
   0x3   :  { %11 = vsyncpa [#allocation3], 0 }
   0x4   :  { %13 = vsyncpa [#allocation3 + $0x1], 0 }
   0x5   :  { %14 = vsyncpa [#allocation6], 0 }
   0x6   :  { %16 = vsyncpa [#allocation6 + $0x1], 0 }
   0x7   :  { %17 = vsyncpa [#allocation9], 0 }
   0x8   :  { %18 = vsyncpa [#allocation4], 0 }
   0x9   :  { %20 = vsyncpa [#allocation4 + $0x1], 0  ;;  %s1441_s21 = smov 0   ;;  %s1443_s22 = smov 0  }
   0xa   :  { %s1445_s23 = smov 0   ;;  %s1447_s24 = smov 0  }
   0xb LB: > { %1808 = sst [smem:[#allocation16_spill]] %s1394_s24  ;;  %s1462_s25 = sadd.s32 4294967295, %s1394_s24   ;;  %s1394_s24 = sphi %s1447_s24, %s1841_s24   ;;  %s1390_s23 = sphi %s1445_s23, %s1845_s23   ;;  %s1386_s22 = sphi %s1443_s22, %s1844_s22   ;;  %s1382_s21 = sphi %s1441_s21, %s1843_s21  }
   0xc   : > { %s955_s26 = sadd.s32 4294967294, %s1394_s24   ;;  %s1466_s27 = sadd.s32 1, %s1394_s24  }
   0xd   : > { %1809 = sst [smem:[#allocation17_spill]] %s1466_s27  ;;  %s33_s28 = sadd.s32 1, %s1390_s23 }
   0xe   : > { %s30_s29 = ssub.s32 %s1394_s24, %s1466_s27  ;;  %p40_p0 = scmp.ne.s32.totalorder %s1390_s23, %s1386_s22 }
   0xf   : > { %p31_p1 = scmp.eq.s32.totalorder %s30_s29, 0  ;;  %p41_p2 = scmp.eq.s32.totalorder %s1394_s24, 0 }
  0x10   : > { %p46_p3 = scmp.ne.s32.totalorder %s1386_s22, %s1382_s21  ;;  %p1786_p4 = scmp.eq.s32.totalorder %s1462_s25, 0 }
  0x11   : > { %s1478_s30 = scalar_select %p31_p1, %s1390_s23, %s33_s28  }
  0x12   : > { %p1480_p5 = por %p41_p2, %p40_p0  ;;  %p1486_p6 = por %p1786_p4, %p46_p3 }
  0x13   : > { %1810 = sst [smem:[#allocation18_spill]] %s1478_s30  ;;  %p185_p7 = scmp.eq.s32.totalorder %s1462_s25, 1 }
  0x14   : > { %s1811_s7 = scalar_select %p1480_p5, 1, 0 }
  0x15   : > { %s1812_s8 = scalar_select %p1486_p6, 1, 0 }
  0x16   : > { %p191_p8 = scmp.eq.s32.totalorder %s955_s26, 1  ;;  %p956_p9 = scmp.ge.s32.totalorder %s1394_s24, 1 }
  0x17   : > { %p198_p10 = scmp.lt.s32.totalorder %s1394_s24, 3  ;;  %p1493_p11 = por %p185_p7, %p40_p0 }
  0x18   : > { %p1497_p12 = por %p191_p8, %p46_p3  ;;  %s1396_s12 = smov [#allocation8]  }
  0x19   : > { %s1813_s9 = scalar_select %p1493_p11, 1, 0 }
  0x1a   : > { %s1814_s10 = scalar_select %p1497_p12, 1, 0 }
  0x1b   : > { %p1501_p13 = pnand %p956_p9, %p198_p10  ;;  %s210_s13 = sshll.u32 %s1396_s12, 4  ;;  %s211_s13 = int_to_ptr.vmem [resolvable:$true] %s210_s13 }
  0x1c   : > { %1815 = sst [smem:[#allocation19_spill]] %s1814_s10  ;;  %s1790_s15 = sand.u32 1, %s1390_s23  }
  0x1d   : > { %s1816_s11 = scalar_select %p1501_p13, 1, 0 }
  0x1e   : > { %p1109_p1 = pneg %p1501_p13  ;;  %s1518_s16 = sshll.u32 %s1790_s15, 4 }
  0x1f   : > { %s1818_s3 = sld [smem:[#allocation21_spill]] }
  0x20   : > { %p1509_p2 = pnand %p1109_p1, %p1786_p4 }
  0x22   : > { %s1817_s14 = scalar_select %p1509_p2, 1, 0 }
  0x23   : > { %p1795_p8 = pneg %p1509_p2 }
  0x25   : > { %s1174_s19 = scalar_lea.hbm %s1818_s3, 512 }
  0x26   : > { %p1175_p7 = scmp.ne.s32.totalorder %s1818_s3, %s1174_s19  ;;  %p1181_p1 = scmp.lt.u32.totalorder %s1174_s19, %s1818_s3 }
  0x28   : > { %p1177_p9 = pnand %p1795_p8, %p1175_p7 }
  0x2a   : > { %p1178_p10 = pneg %p1177_p9 }
  0x2c   : > { %p1183_p0 = pnand %p1181_p1, %p1178_p10 }
  0x2e   : > { %1186 = shalt.err (!%p1183_p0)
}
  0x2f   : > { %s1187_s12 = scalar_lea.vmem %s211_s13, 512  ;;  %p1195_p11 = scmp.lt.s32.totalorder %s211_s13, %s211_s13 }
  0x30   : > { %p1188_p4 = scmp.ne.s32.totalorder %s211_s13, %s1187_s12  ;;  %p1196_p6 = scmp.lt.s32.totalorder %s1187_s12, %s1187_s12 }
  0x32   : > { %p1190_p3 = pnand %p1188_p4, %p1795_p8  ;;  %p1197_p13 = por %p1196_p6, %p1195_p11 }
  0x34   : > { %p1191_p12 = pneg %p1190_p3 }
  0x36   : > { %p1198_p5 = pnand %p1197_p13, %p1191_p12 }
  0x38   : > { %1201 = shalt.err (!%p1198_p5)
}
  0x39   : > { %s1791_s17 = smov 128   ;;  %s1793_s18 = smov 8  }
  0x3a   : > { %1112 = dma.hbm_to_vmem [thread:$0]  (!%p1509_p2), %s1818_s3, 512, %s211_s13, [#allocation9], %s1791_s17, %s1791_s17, %s1793_s18  }
  0x3b   : > { %s1546_s26 = sshll.u32 %s1394_s24, 8  ;;  %p1819_p4 = scmp.ne.s32.totalorder %s1811_s7, 0 }
  0x3c   : > { %p1820_p5 = scmp.lt.s32.totalorder %s1394_s24, 2  ;;  %s261_s29 = sand.u32 1, %s1394_s24  }
  0x3d   : > { %s1822_s1 = sld [smem:[#allocation20_spill]]  ;;  %s265_s13 = scalar_lea.vmem [#allocation5], %s1518_s16 }
  0x3e   : > { %p1552_p6 = pnand %p1820_p5, %p1819_p4  ;;  %s272_s19 = sshll.u32 %s265_s13, 4  ;;  %s1564_s19 = int_to_ptr.vmem [resolvable:$true] %s272_s19 }
  0x3f   : > { %s1566_s7 = scalar_lea.sflag [#allocation6], %s261_s29 }
  0x40   : > { %s1821_s28 = scalar_select %p1552_p6, 1, 0 }
  0x41   : > { %p1572_p12 = pneg %p1552_p6 }
  0x43   : > { %s1561_s30 = scalar_lea.hbm %s1822_s1, %s1546_s26  ;;  %s1207_s18 = scalar_lea.hbm %s1822_s1, 512 }
  0x44   : > { %s1202_s20 = scalar_lea.hbm %s1561_s30, 256  ;;  %p1208_p3 = scmp.lt.u32.totalorder %s1561_s30, %s1822_s1 }
  0x45   : > { %p1203_p11 = scmp.ne.s32.totalorder %s1561_s30, %s1202_s20  ;;  %p1209_p7 = scmp.lt.u32.totalorder %s1207_s18, %s1202_s20 }
  0x46   : > { %s1823_s17 = scalar_select %p1572_p12, 1, 0 }
  0x47   : > { %p1205_p13 = pnand %p1572_p12, %p1203_p11  ;;  %p1210_p9 = por %p1209_p7, %p1208_p3 }
  0x48   : > { %p1211_p10 = scmp.lt.u32.totalorder %s1202_s20, %s1561_s30 }
  0x49   : > { %p1206_p0 = pneg %p1205_p13 }
  0x4a   : > { %p1212_p1 = por %p1211_p10, %p1210_p9 }
  0x4c   : > { %p1213_p4 = pnand %p1212_p1, %p1206_p0 }
  0x4e   : > { %1216 = shalt.err (!%p1213_p4)
}
  0x4f   : > { %s1217_s29 = scalar_lea.vmem %s1564_s19, 256  ;;  %s1399_s15 = smov [#allocation5]  }
  0x50   : > { %p1218_p5 = scmp.ne.s32.totalorder %s1564_s19, %s1217_s29  ;;  %s1222_s12 = sshll.u32 %s1399_s15, 4  ;;  %s1223_s12 = int_to_ptr.vmem [resolvable:$false] %s1222_s12 }
  0x51   : > { %s1224_s3 = scalar_lea.vmem %s1223_s12, 512  ;;  %p1225_p8 = scmp.lt.s32.totalorder %s1564_s19, %s1223_s12 }
  0x52   : > { %p1220_p11 = pnand %p1218_p5, %p1572_p12  ;;  %p1226_p2 = scmp.lt.s32.totalorder %s1224_s3, %s1217_s29 }
  0x54   : > { %p1221_p13 = pneg %p1220_p11  ;;  %p1227_p3 = por %p1226_p2, %p1225_p8 }
  0x56   : > { %p1228_p7 = pnand %p1227_p3, %p1221_p13 }
  0x58   : > { %1231 = shalt.err (!%p1228_p7)
}
  0x59   : > { %s1824_s18 = smov 8   ;;  %s1825_s20 = smov 128  }
  0x5a   : > { %1122 = dma.hbm_to_vmem [thread:$0]  (!%p1552_p6), %s1561_s30, 256, %s1564_s19, %s1566_s7, %s1825_s20, %s1825_s20, %s1824_s18  }
  0x5b   : > { %s1400_s13 = smov [#allocation10]   ;;  %s1232_s29 = scalar_lea.hbm %s1783_s4, 512 }
  0x5c   : > { %s223_s1 = sshll.u32 %s1400_s13, 4  ;;  %p1233_p2 = scmp.ne.s32.totalorder %s1783_s4, %s1232_s29  ;;  %s224_s1 = int_to_ptr.vmem [resolvable:$true] %s223_s1 }
  0x5d   : > { %p1826_p8 = scmp.ne.s32.totalorder %s1817_s14, 0  ;;  %p1239_p1 = scmp.lt.u32.totalorder %s1232_s29, %s1783_s4 }
  0x5f   : > { %p1827_p0 = pneg %p1826_p8 }
  0x61   : > { %p1235_p9 = pnand %p1233_p2, %p1827_p0 }
  0x63   : > { %p1236_p10 = pneg %p1235_p9 }
  0x65   : > { %p1241_p4 = pnand %p1239_p1, %p1236_p10 }
  0x67   : > { %1244 = shalt.err (!%p1241_p4)
}
  0x68   : > { %s1245_s30 = scalar_lea.vmem %s224_s1, 512  ;;  %p1828_p11 = pmov %p1827_p0 }
  0x69   : > { %p1246_p5 = scmp.ne.s32.totalorder %s224_s1, %s1245_s30  ;;  %p1253_p7 = scmp.lt.s32.totalorder %s224_s1, %s224_s1 }
  0x6a   : > { %p1254_p6 = scmp.lt.s32.totalorder %s1245_s30, %s1245_s30 }
  0x6b   : > { %p1248_p13 = pnand %p1246_p5, %p1828_p11 }
  0x6c   : > { %p1255_p12 = por %p1254_p6, %p1253_p7 }
  0x6d   : > { %p1249_p3 = pneg %p1248_p13 }
  0x6f   : > { %p1256_p0 = pnand %p1255_p12, %p1249_p3 }
  0x71   : > { %1259 = shalt.err (!%p1256_p0)
}
  0x72   : > { %1115 = dma.hbm_to_vmem [thread:$0]  (!%p1826_p8), %s1783_s4, 512, %s224_s1, [#allocation9], %s1825_s20, %s1825_s20, %s1824_s18  }
  0x73   : > { %s1626_s13 = scalar_lea.hbm %s1779_s0, %s1546_s26  ;;  %s244_s14 = scalar_lea.vmem [#allocation2], %s1518_s16 }
  0x74   : > { %s251_s15 = sshll.u32 %s244_s14, 4  ;;  %s1829_s29 = sand.u32 1, %s1390_s23   ;;  %s1629_s15 = int_to_ptr.vmem [resolvable:$true] %s251_s15 }
  0x75   : > { %s1633_s12 = scalar_lea.sflag [#allocation3], %s1829_s29  ;;  %s1260_s3 = scalar_lea.hbm %s1626_s13, 256 }
  0x76   : > { %p1261_p6 = scmp.ne.s32.totalorder %s1626_s13, %s1260_s3  ;;  %p1830_p12 = scmp.ne.s32.totalorder %s1823_s17, 0 }
  0x77   : > { %s1265_s24 = scalar_lea.hbm %s1779_s0, 512  ;;  %p1266_p9 = scmp.lt.u32.totalorder %s1626_s13, %s1779_s0 }
  0x78   : > { %p1263_p2 = pnand %p1261_p6, %p1830_p12  ;;  %p1267_p10 = scmp.lt.u32.totalorder %s1265_s24, %s1260_s3 }
  0x79   : > { %p1269_p4 = scmp.lt.u32.totalorder %s1260_s3, %s1626_s13 }
  0x7a   : > { %p1264_p8 = pneg %p1263_p2  ;;  %p1268_p1 = por %p1267_p10, %p1266_p9 }
  0x7c   : > { %p1270_p5 = por %p1269_p4, %p1268_p1 }
  0x7e   : > { %p1271_p11 = pnand %p1270_p5, %p1264_p8 }
  0x80   : > { %1274 = shalt.err (!%p1271_p11)
}
  0x81   : > { %s1275_s19 = scalar_lea.vmem %s1629_s15, 256  ;;  %s1401_s14 = smov [#allocation2]  }
  0x82   : > { %p1276_p13 = scmp.ne.s32.totalorder %s1629_s15, %s1275_s19  ;;  %s1280_s29 = sshll.u32 %s1401_s14, 4  ;;  %s1281_s29 = int_to_ptr.vmem [resolvable:$false] %s1280_s29 }
  0x83   : > { %s1282_s1 = scalar_lea.vmem %s1281_s29, 512  ;;  %p1283_p0 = scmp.lt.s32.totalorder %s1629_s15, %s1281_s29 }
  0x84   : > { %p1278_p3 = pnand %p1276_p13, %p1830_p12  ;;  %p1284_p6 = scmp.lt.s32.totalorder %s1282_s1, %s1275_s19 }
  0x86   : > { %p1279_p7 = pneg %p1278_p3  ;;  %p1285_p2 = por %p1284_p6, %p1283_p0 }
  0x88   : > { %p1286_p9 = pnand %p1285_p2, %p1279_p7 }
  0x8a   : > { %1289 = shalt.err (!%p1286_p9)
}
  0x8b   : > { %p1831_p8 = scmp.ne.s32.totalorder %s1821_s28, 0  ;;  %s1664_s24 = scalar_lea.hbm %s1781_s2, %s1546_s26 }
  0x8c   : > { %s286_s27 = scalar_lea.vmem [#allocation7], %s1518_s16  ;;  %s1290_s19 = scalar_lea.hbm %s1664_s24, 256 }
  0x8d   : > { %1119 = dma.hbm_to_vmem [thread:$0]  (!%p1831_p8), %s1626_s13, 256, %s1629_s15, %s1633_s12, %s1825_s20, %s1825_s20, %s1824_s18  }
  0x8e   : > { %s293_s10 = sshll.u32 %s286_s27, 4  ;;  %p1291_p10 = scmp.ne.s32.totalorder %s1664_s24, %s1290_s19  ;;  %s1667_s10 = int_to_ptr.vmem [resolvable:$true] %s293_s10 }
  0x8f   : > { %s1295_s15 = scalar_lea.hbm %s1781_s2, 512  ;;  %p1296_p5 = scmp.lt.u32.totalorder %s1664_s24, %s1781_s2 }
  0x90   : > { %p1293_p1 = pnand %p1291_p10, %p1830_p12  ;;  %p1297_p11 = scmp.lt.u32.totalorder %s1295_s15, %s1290_s19 }
  0x91   : > { %p1299_p3 = scmp.lt.u32.totalorder %s1290_s19, %s1664_s24 }
  0x92   : > { %p1294_p4 = pneg %p1293_p1  ;;  %p1298_p13 = por %p1297_p11, %p1296_p5 }
  0x94   : > { %p1300_p7 = por %p1299_p3, %p1298_p13 }
  0x96   : > { %p1301_p0 = pnand %p1300_p7, %p1294_p4 }
  0x98   : > { %1304 = shalt.err (!%p1301_p0)
}
  0x99   : > { %s1305_s16 = scalar_lea.vmem %s1667_s10, 256  ;;  %s1402_s29 = smov [#allocation7]  }
  0x9a   : > { %p1306_p6 = scmp.ne.s32.totalorder %s1667_s10, %s1305_s16  ;;  %s1310_s1 = sshll.u32 %s1402_s29, 4  ;;  %s1311_s1 = int_to_ptr.vmem [resolvable:$false] %s1310_s1 }
  0x9b   : > { %s1312_s3 = scalar_lea.vmem %s1311_s1, 512  ;;  %p1313_p10 = scmp.lt.s32.totalorder %s1667_s10, %s1311_s1 }
  0x9c   : > { %p1308_p2 = pnand %p1306_p6, %p1830_p12  ;;  %p1314_p1 = scmp.lt.s32.totalorder %s1312_s3, %s1305_s16 }
  0x9e   : > { %p1309_p9 = pneg %p1308_p2  ;;  %p1315_p5 = por %p1314_p1, %p1313_p10 }
  0xa0   : > { %p1316_p11 = pnand %p1315_p5, %p1309_p9 }
  0xa2   : > { %1319 = shalt.err (!%p1316_p11)
}
  0xa3   : > { %1125 = dma.hbm_to_vmem [thread:$0]  (!%p1831_p8), %s1664_s24, 256, %s1667_s10, %s1566_s7, %s1825_s20, %s1825_s20, %s1824_s18  }
  0xa4   : > { %p1832_p12 = scmp.ne.s32.totalorder %s1816_s11, 0 }
  0xa5   : > { %s1697_s17 = sand.u32 (!%p1832_p12), 1, %s1386_s22   ;;  %p1833_p4 = scmp.ne.s32.totalorder (!%p1832_p12), %s1812_s8, 0 }
  0xa6   : > { %305 = sbr.rel (%p1832_p12) target bundleno = 860 (0x35c), region = 44  ;;  %s1700_s30 = sshll.u32 (!%p1832_p12), %s1697_s17, 4 }
  0xa7   : > { %s308_s28 = scalar_lea.sflag (!%p1832_p12), [#allocation3], %s1697_s17  ;;  %s311_s27 = scalar_lea.vmem (!%p1832_p12), [#allocation2], %s1700_s30 }
  0xad   : > { %1365 = dma.done.wait (%p1833_p4), %s308_s28, 256  }
  0xae   : > { %1367 = vsyncadd (%p1833_p4), %s308_s28, 4294967040  ;;  %s316_s11 = sand.u32 1, %s1462_s25   ;;  %s320_s18 = scalar_lea.vmem [#allocation5], %s1700_s30 }
  0xaf   : > { %s317_s7 = scalar_lea.sflag [#allocation6], %s316_s11 }
  0xb0   : > { %1369 = dma.done.wait (%p1833_p4), %s317_s7, 512  }
  0xb1   : > { %1371 = vsyncadd (%p1833_p4), %s317_s7, 4294966784  ;;  %s329_s20 = scalar_lea.vmem [#allocation7], %s1700_s30  ;;  %p1834_p8 = scmp.eq.s32.totalorder %s1462_s25, 0 }
  0xb3   : > { %1373 = dma.done.wait (%p1834_p8), [#allocation9], 1024   ;;  %p1835_p13 = pmov %p1834_p8 }
  0xb4   : > { %vm382_vm0 = vcmask 130048   ;;  %v380_v0 = vld [vmem:[%s329_s20] sm:$0xff]  ;;  %v381_v1 = vld [vmem:[%s329_s20 + $0x8] sm:$0xff]  ;;  %vm632_vm1 = vcmask 261120   ;;  %s375_s8 = scalar_lea.vmem [#allocation11], %s1700_s30  ;;  %s995_s14 = sshll.u32 %s1462_s25, 8 }
  0xb5   : > { %1375 = vsyncadd (%p1835_p13), [#allocation9], 4294966272  ;;  %v376_v2 = vld [vmem:[%s311_s27] sm:$0xff]  ;;  %v1063_v3 = vpack.c.bf16 %v381_v1, %v380_v0  ;;  %v377_v4 = vld [vmem:[%s311_s27 + $0x8] sm:$0xff]  ;;  %s820_s24 = sshll.u32 %s375_s8, 4  ;;  %s1735_s12 = scalar_lea.hbm %s1785_s6, %s995_s14  ;;  %s1730_s24 = int_to_ptr.vmem [resolvable:$true] %s820_s24 }
  0xb6   : > { %1024 = vmatprep.mubr.msk.f32.mxu0 %vm382_vm0, %v376_v2  ;;  %v378_v5 = vld [vmem:[%s320_s18] sm:$0xff]  ;;  %v379_v6 = vld [vmem:[%s320_s18 + $0x8] sm:$0xff]  ;;  %s807_s26 = scalar_lea.sflag [#allocation4], %s1697_s17  ;;  %s1320_s16 = scalar_lea.vmem %s1730_s24, 256 }
  0xb7   : > { %1064 = vmatprep.subr.bf16.mxu0 %v1063_v3  ;;  %v628_v7 = vld [vmem:[#allocation10] sm:$0xff]  ;;  %v629_v8 = vld [vmem:[#allocation10 + $0x8] sm:$0xff]  ;;  %v630_v9 = vld [vmem:[#allocation10 + $0x10] sm:$0xff]  ;;  %p1321_p3 = scmp.ne.s32.totalorder %s1730_s24, %s1320_s16  ;;  %p1836_p7 = scmp.ne.s32.totalorder %s1813_s9, 0 }
  0xb8   : > { %1066 = vmatpush3.bf16.msra.mxu0 %v1063_v3  ;;  %v1075_v10 = vpack.c.bf16 %v629_v8, %v628_v7  ;;  %v631_v11 = vld [vmem:[#allocation10 + $0x18] sm:$0xff]  ;;  %v624_v22 = vld [vmem:[#allocation8] sm:$0xff]  ;;  %v625_v23 = vld [vmem:[#allocation8 + $0x8] sm:$0xff]  ;;  %s1403_s25 = smov [#allocation11]  }
  0xb9   : > { %1068 = vmatprep.subr.bf16.mxu0 %v1063_v3  ;;  %v1079_v12 = vpack.c.bf16 %v631_v11, %v630_v9  ;;  %v1083_v24 = vpack.c.bf16 %v625_v23, %v624_v22  ;;  %v626_v25 = vld [vmem:[#allocation8 + $0x10] sm:$0xff]  ;;  %v627_v26 = vld [vmem:[#allocation8 + $0x18] sm:$0xff]  ;;  %v986_v30 = vld [vmem:[%s1784_s5] ss:$0 sm:$0xff]  ;;  %p1322_p0 = pnand %p1321_p3, %p1836_p7  ;;  %s1324_s29 = sshll.u32 %s1403_s25, 4  ;;  %s1325_s29 = int_to_ptr.vmem [resolvable:$false] %s1324_s29 }
  0xba   : > { %1076 = vmatprep.subr.bf16.mxu1 %v1075_v10  ;;  %v1087_v29 = vpack.c.bf16 %v627_v26, %v626_v25  ;;  %s1326_s1 = scalar_lea.vmem %s1325_s29, 512  ;;  %p1327_p2 = scmp.lt.s32.totalorder %s1730_s24, %s1325_s29 }
  0xbb   : > { %1025 = vmatmul.mubr.msk.f32.vlgmr.msra.gmra.mrb[0].mxu0 %vm382_vm0, %v377_v4  ;;  %1078 = vmatpush3.bf16.msra.mxu1 %v1075_v10  ;;  %p1323_p6 = pneg %p1322_p0  ;;  %p1328_p9 = scmp.lt.s32.totalorder %s1326_s1, %s1320_s16 }
  0xbc   : > { %1070 = vmatpush3.bf16.msra.mxu0 %v1063_v3  ;;  %1031 = vmatprep.mubr.msk.f32.mxu0 %vm382_vm0, %v378_v5 }
  0xbd   : > { %1080 = vmatprep.subr.bf16.mxu1 %v1079_v12  ;;  %p1329_p10 = por %p1328_p9, %p1327_p2 }
  0xbf   : > { %1032 = vmatmul.mubr.msk.f32.vlgmr.msra.gmra.mrb[2].mxu0 %vm382_vm0, %v379_v6  ;;  %1082 = vmatpush3.bf16.msra.mxu1 %v1079_v12  ;;  %p1330_p1 = pnand %p1329_p10, %p1323_p6 }
  0xc0   : > { %1038 = vmatprep.mubr.msk.f32.mxu0 %vm382_vm0, %v376_v2  ;;  %1084 = vmatprep.subr.bf16.mxu1 %v1083_v24 }
 0x18e   : > { %v1026_v13 = vpop.f32.mrb[0].mxu0 }
 0x18f   : > { %v548_v14 = vmul.f32 %v1026_v13, %v381_v1  ;;  %v455_v15 = vpop.f32.mrb[1].mxu0 }
 0x190   : > { %v547_v16 = vmul.f32 %v455_v15, %v380_v0 }
 0x192   : > { %v1071_v17 = vpack.c.bf16 %v548_v14, %v547_v16  ;;  %v1033_v18 = vpop.f32.mrb[2].mxu0 }
 0x193   : > { %v546_v19 = vadd.f32 %v1033_v18, %v1026_v13  ;;  %v536_v20 = vpop.f32.mrb[3].mxu0 }
 0x194   : > { %v545_v21 = vadd.f32 %v536_v20, %v455_v15  ;;  %1072 = vmatprep.subr.bf16.mxu0 %v1071_v17 }
 0x195   : > { %1074 = vmatpush3.bf16.msra.mxu0 %v1071_v17 }
 0x198   : > { %1039 = vmatmul.mubr.msk.f32.vlgmr.msra.gmra.mrb[4].mxu0 %vm382_vm0, %v377_v4 }
 0x26b   : > { %v1040_v27 = vpop.f32.mrb[4].mxu0 }
 0x26c   : > { %v615_v28 = vpop.f32.mrb[5].mxu0 }
 0x26d   : > { %1049 = vmatprep.mubr.msk.f32.mxu1 %vm632_vm1, %v615_v28 }
 0x26e   : > { %1050 = vmatmul.mubr.msk.f32.vlgmr.msra.gmra.mrb[0].mxu1 %vm632_vm1, %v1040_v27 }
 0x26f   : > { %1086 = vmatpush3.bf16.msra.mxu1 %v1083_v24  ;;  %1060 = vmatprep.mubr.msk.f32.mxu1 %vm632_vm1, %v545_v21 }
 0x270   : > { %1088 = vmatprep.subr.bf16.mxu1 %v1087_v29 }
 0x273   : > { %1090 = vmatpush3.bf16.msra.mxu1 %v1087_v29 }
 0x276   : > { %1061 = vmatmul.mubr.msk.f32.vlgmr.msra.gmra.mrb[0].mxu1 %vm632_vm1, %v546_v19 }
 0x349   : > { %v1062_v31 = vpop.f32.mrb[0].mxu1 }
 0x34a   : > { %v803_v32 = vadd.f32 %v1062_v31, %v986_v30  ;;  %v786_v33 = vpop.f32.mrb[1].mxu1 }
 0x34b   : > { %v802_v34 = vadd.f32 %v986_v30, %v786_v33 }
 0x34c   : > { %805 = vst [vmem:[%s375_s8 + $0x8] sm:$0xff] %v803_v32 }
 0x34d   : > { %804 = vst [vmem:[%s375_s8] sm:$0xff] %v802_v34 }
 0x34e   : > { %1333 = shalt.err (!%p1330_p1)
}
 0x34f   : > { %s1334_s3 = scalar_lea.hbm %s1735_s12, 256  ;;  %s1338_s27 = scalar_lea.hbm %s1785_s6, 512 }
 0x350   : > { %p1335_p5 = scmp.ne.s32.totalorder %s1735_s12, %s1334_s3  ;;  %p1339_p4 = scmp.lt.u32.totalorder %s1735_s12, %s1785_s6 }
 0x351   : > { %p1340_p8 = scmp.lt.u32.totalorder %s1338_s27, %s1334_s3  ;;  %p1342_p3 = scmp.lt.u32.totalorder %s1334_s3, %s1735_s12 }
 0x352   : > { %p1336_p11 = pnand %p1335_p5, %p1836_p7 }
 0x353   : > { %p1341_p13 = por %p1340_p8, %p1339_p4 }
 0x354   : > { %p1337_p12 = pneg %p1336_p11 }
 0x355   : > { %p1343_p0 = por %p1342_p3, %p1341_p13 }
 0x357   : > { %p1344_p6 = pnand %p1343_p0, %p1337_p12 }
 0x359   : > { %1347 = shalt.err (!%p1344_p6)
}
 0x35a   : > { %s1404_s18 = smov 128   ;;  %s1405_s20 = smov 8  }
 0x35b   : > { %1107 = dma.vmem_to_hbm [thread:$0]  (%p1836_p7), %s1730_s24, 256, %s1735_s12, %s807_s26, %s1404_s18, %s1404_s18, %s1405_s20  }
 0x35c PF: > { %s1837_s8 = sld [smem:[#allocation19_spill]]  ;;  %s1838_s10 = sld [smem:[#allocation16_spill]] }
 0x35d   : > { %s835_s19 = sand.u32 1, %s1382_s21  }
 0x35e   : > { %s836_s14 = scalar_lea.sflag [#allocation4], %s835_s19 }
 0x362   : > { %p1839_p2 = scmp.ne.s32.totalorder %s1837_s8, 0  ;;  %p1840_p9 = scmp.ge.s32.totalorder %s1838_s10, 2 }
 0x364   : > { %p1127_p10 = pnand %p1840_p9, %p1839_p2 }
 0x366   : > { %1377 = dma.done.wait (!%p1127_p10), %s836_s14, 256  }
 0x367   : > { %1379 = vsyncadd (!%p1127_p10), %s836_s14, 4294967040  ;;  %s1841_s24 = sld [smem:[#allocation17_spill]]  ;;  %s1842_s13 = sld [smem:[#allocation18_spill]] }
 0x368   : > { %s1843_s21 = smov %s1386_s22  ;;  %s1844_s22 = smov %s1390_s23 }
 0x36d   : > { %p23_p1 = scmp.ge.s32.totalorder %s1841_s24, 4   ;;  %s1845_s23 = smov %s1842_s13 }
 0x36f   :  { %25 = sbr.rel (!%p23_p1) target bundleno = 11 (0xb), region = 121 }
 0x376   :  { %841 = vsyncpa [#allocation3], 1 }
 0x377   :  { %843 = vsyncpa [#allocation3 + $0x1], 1 }
 0x378   :  { %844 = vsyncpa [#allocation6], 1 }
 0x379   :  { %846 = vsyncpa [#allocation6 + $0x1], 1 }
 0x37a   :  { %847 = vsyncpa [#allocation9], 1 }
 0x37b   :  { %848 = vsyncpa [#allocation4], 1 }
 0x37c   :  { %850 = vsyncpa [#allocation4 + $0x1], 1 }

</bundles_post_ra>
